<compile_context>
chip_gen: v5e
topology: v5e:2x2
jax: 0.10.0
libtpu: 0.0.40
codegen_flags: <defaults>
</compile_context>

<pallas_src>
import jax
import jax.numpy as jnp
from jax.experimental import pallas as pl
from jax.experimental.pallas import tpu as pltpu


def _largest_divisor_tile(total: int, max_tile: int, align: int) -> int:
    """Largest t <= max_tile with t % align == 0 and total % t == 0, else `total`."""
    t = min(max_tile, total)
    t -= t % align
    while t >= align:
        if total % t == 0:
            return t
        t -= align
    return total


def _mean_pool_kernel(x_ref, m_ref, o_ref, acc_ref, cnt_ref):
    # x_ref:  (TB, TS, D)   segment embeddings tile
    # m_ref:  (TB, TS, 1)   attention-mask tile (f32)
    # o_ref:  (TB, D)       pooled document embeddings (written on last S-step)
    # acc_ref:(TB, D) f32   running masked sum
    # cnt_ref:(TB, 1) f32   running mask count
    s = pl.program_id(1)

    @pl.when(s == 0)
    def _init():
        acc_ref[...] = jnp.zeros_like(acc_ref)
        cnt_ref[...] = jnp.zeros_like(cnt_ref)

    x = x_ref[...].astype(jnp.float32)          # (TB, TS, D)
    m = m_ref[...].astype(jnp.float32)          # (TB, TS, 1)
    acc_ref[...] += jnp.sum(x * m, axis=1)      # (TB, D)
    cnt_ref[...] += jnp.sum(m, axis=1)          # (TB, 1)

    @pl.when(s == pl.num_programs(1) - 1)
    def _finalize():
        denom = jnp.maximum(cnt_ref[...], 1e-9)
        o_ref[...] = (acc_ref[...] / denom).astype(o_ref.dtype)


def mean_pool_embeddings_with_attention_mask(segment_embeddings: jnp.ndarray,
                                             attention_mask: jnp.ndarray) -> jnp.ndarray:
    """segment_embeddings: (B, S, D); attention_mask: (B, S). Returns (B, D)."""
    B, S, D = segment_embeddings.shape
    itemsize = segment_embeddings.dtype.itemsize

    # Tiny mask: cast to f32 and add a trailing singleton dim for lane broadcast.
    mask = attention_mask.astype(jnp.float32).reshape(B, S, 1)

    # --- tile selection ------------------------------------------------------
    # Batch tile: output block is (TB, D); TB must be a multiple of 8 or full B.
    if B % 8 == 0:
        TB = _largest_divisor_tile(B, 64, 8)
    else:
        TB = B
    # Segment tile: keep the embeddings block around <= ~2 MiB so the
    # double-buffered working set fits comfortably in scoped VMEM on all chips
    # (v5e 16 MiB, v6e 32 MiB, v7x 32 MiB scoped / 64 MiB physical).
    bytes_per_seg_row = max(TB * D * itemsize, 1)
    ts_budget = max(8, (2 * 1024 * 1024) // bytes_per_seg_row)
    if S % 8 == 0:
        TS = _largest_divisor_tile(S, ts_budget, 8)
    else:
        TS = S

    grid = (B // TB, S // TS)

    out = pl.pallas_call(
        _mean_pool_kernel,
        out_shape=jax.ShapeDtypeStruct((B, D), segment_embeddings.dtype),
        grid_spec=pltpu.PrefetchScalarGridSpec(
            num_scalar_prefetch=0,
            grid=grid,
            in_specs=[
                pl.BlockSpec((TB, TS, D), lambda b, s: (b, s, 0)),
                pl.BlockSpec((TB, TS, 1), lambda b, s: (b, s, 0)),
            ],
            out_specs=pl.BlockSpec((TB, D), lambda b, s: (b, 0)),
            scratch_shapes=[
                pltpu.VMEM((TB, D), jnp.float32),
                pltpu.VMEM((TB, 1), jnp.float32),
            ],
        ),
        compiler_params=pltpu.CompilerParams(
            dimension_semantics=("parallel", "arbitrary"),
        ),
        cost_estimate=pl.CostEstimate(
            flops=2 * B * S * D,
            transcendentals=0,
            bytes_accessed=B * S * D * itemsize + B * S * 4 + B * D * itemsize,
        ),
    )(segment_embeddings, mask)
    return out


def document_embedder_forward(segment_embeddings: jnp.ndarray,
                              attention_mask: jnp.ndarray) -> jnp.ndarray:
    # TODO(synk): `transform_segment_embeddings` is abstract in DocumentEmbedder
    # (subclasses supply an RNN/transformer over segments); treated as identity.
    transformed_segment_embeddings = segment_embeddings
    return mean_pool_embeddings_with_attention_mask(
        transformed_segment_embeddings, attention_mask)


if __name__ == "__main__":
    # Small deterministic example consistent with the module's forward:
    # batch=2 documents, seq=8 segments each, embedding_size=32.
    batch, seq, emb_size = 2, 8, 32

    key = jax.random.PRNGKey(0)
    segment_embeddings = jax.random.normal(key, (batch, seq, emb_size), dtype=jnp.float32)

    # Attention mask with padding (second document only has 4 valid segments).
    lengths = jnp.array([seq, seq // 2], dtype=jnp.int32)
    attention_mask = (jnp.arange(seq)[None, :] < lengths[:, None]).astype(jnp.float32)

    out = document_embedder_forward(segment_embeddings, attention_mask)
    out = jax.block_until_ready(out)

    # Pure-JAX reference for masked mean pooling.
    m = attention_mask[..., None]
    ref = (segment_embeddings * m).sum(axis=1) / jnp.maximum(m.sum(axis=1), 1e-9)

    assert out.shape == (batch, emb_size)
    assert jnp.allclose(out, ref, atol=1e-5, rtol=1e-5), "mismatch vs reference"

    print("KERNEL_OK")
</pallas_src>

<mosaic_0001>
module attributes {stable_mosaic.version = 11 : i64} {
  func.func @_mean_pool_kernel(%arg0: i32, %arg1: i32, %arg2: memref<2x8x32xf32, #tpu.memory_space<vmem>>, %arg3: memref<2x8x1xf32, #tpu.memory_space<vmem>>, %arg4: memref<2x32xf32, #tpu.memory_space<vmem>>, %arg5: memref<2x32xf32, #tpu.memory_space<vmem>>, %arg6: memref<2x1xf32, #tpu.memory_space<vmem>>) attributes {dimension_semantics = [#tpu.dimension_semantics<parallel>, #tpu.dimension_semantics<arbitrary>], iteration_bounds = array<i64: 1, 1>, scalar_prefetch = 0 : i64, scratch_operands = 2 : i64, tpu.core_type = #tpu.core_type<tc>, window_params = [{transform_indices = @transform_0, window_bounds = array<i64: 2, 8, 32>}, {transform_indices = @transform_1, window_bounds = array<i64: 2, 8, 1>}, {transform_indices = @transform_2, window_bounds = array<i64: 2, 32>}]} {
    %c0_i32 = arith.constant 0 : i32
    %0 = arith.cmpi eq, %arg1, %c0_i32 : i32
    %1 = arith.extui %0 : i1 to i32
    %c0_i32_0 = arith.constant 0 : i32
    %2 = arith.cmpi ne, %1, %c0_i32_0 : i32
    scf.if %2 {
      %cst_17 = arith.constant 0.000000e+00 : f32
      %18 = vector.broadcast %cst_17 : f32 to vector<2x32xf32>
      %c0_18 = arith.constant 0 : index
      %c0_19 = arith.constant 0 : index
      %19 = vector.load %arg5[%c0_18, %c0_19] : memref<2x32xf32, #tpu.memory_space<vmem>>, vector<2x32xf32>
      tpu.vector_store %arg5[%c0_18, %c0_19], %18 {strides = array<i32>} : memref<2x32xf32, #tpu.memory_space<vmem>>, vector<2x32xf32>,
      %cst_20 = arith.constant 0.000000e+00 : f32
      %20 = vector.broadcast %cst_20 : f32 to vector<2x1xf32>
      %c0_21 = arith.constant 0 : index
      %c0_22 = arith.constant 0 : index
      %21 = vector.load %arg6[%c0_21, %c0_22] : memref<2x1xf32, #tpu.memory_space<vmem>>, vector<2x1xf32>
      tpu.vector_store %arg6[%c0_21, %c0_22], %20 {strides = array<i32>} : memref<2x1xf32, #tpu.memory_space<vmem>>, vector<2x1xf32>,
    } else {
    }
    %c0 = arith.constant 0 : index
    %c0_1 = arith.constant 0 : index
    %c0_2 = arith.constant 0 : index
    %3 = vector.load %arg2[%c0, %c0_1, %c0_2] : memref<2x8x32xf32, #tpu.memory_space<vmem>>, vector<2x8x32xf32>
    %c0_3 = arith.constant 0 : index
    %c0_4 = arith.constant 0 : index
    %c0_5 = arith.constant 0 : index
    %4 = vector.load %arg3[%c0_3, %c0_4, %c0_5] : memref<2x8x1xf32, #tpu.memory_space<vmem>>, vector<2x8x1xf32>
    %c0_6 = arith.constant 0 : index
    %c0_7 = arith.constant 0 : index
    %5 = vector.load %arg5[%c0_6, %c0_7] : memref<2x32xf32, #tpu.memory_space<vmem>>, vector<2x32xf32>
    %6 = vector.broadcast %4 : vector<2x8x1xf32> to vector<2x8x32xf32>
    %7 = arith.mulf %3, %6 : vector<2x8x32xf32>
    %cst = arith.constant dense<0.000000e+00> : vector<2x32xf32>
    %8 = vector.multi_reduction <add>, %7, %cst [1] : vector<2x8x32xf32> to vector<2x32xf32>
    %9 = arith.addf %5, %8 : vector<2x32xf32>
    %c0_8 = arith.constant 0 : index
    %c0_9 = arith.constant 0 : index
    %10 = vector.load %arg5[%c0_8, %c0_9] : memref<2x32xf32, #tpu.memory_space<vmem>>, vector<2x32xf32>
    tpu.vector_store %arg5[%c0_8, %c0_9], %9 {strides = array<i32>} : memref<2x32xf32, #tpu.memory_space<vmem>>, vector<2x32xf32>,
    %c0_10 = arith.constant 0 : index
    %c0_11 = arith.constant 0 : index
    %11 = vector.load %arg6[%c0_10, %c0_11] : memref<2x1xf32, #tpu.memory_space<vmem>>, vector<2x1xf32>
    %cst_12 = arith.constant dense<0.000000e+00> : vector<2x1xf32>
    %12 = vector.multi_reduction <add>, %4, %cst_12 [1] : vector<2x8x1xf32> to vector<2x1xf32>
    %13 = arith.addf %11, %12 : vector<2x1xf32>
    %c0_13 = arith.constant 0 : index
    %c0_14 = arith.constant 0 : index
    %14 = vector.load %arg6[%c0_13, %c0_14] : memref<2x1xf32, #tpu.memory_space<vmem>>, vector<2x1xf32>
    tpu.vector_store %arg6[%c0_13, %c0_14], %13 {strides = array<i32>} : memref<2x1xf32, #tpu.memory_space<vmem>>, vector<2x1xf32>,
    %c0_i32_15 = arith.constant 0 : i32
    %15 = arith.cmpi eq, %arg1, %c0_i32_15 : i32
    %16 = arith.extui %15 : i1 to i32
    %c0_i32_16 = arith.constant 0 : i32
    %17 = arith.cmpi ne, %16, %c0_i32_16 : i32
    scf.if %17 {
      %c0_17 = arith.constant 0 : index
      %c0_18 = arith.constant 0 : index
      %18 = vector.load %arg6[%c0_17, %c0_18] : memref<2x1xf32, #tpu.memory_space<vmem>>, vector<2x1xf32>
      %cst_19 = arith.constant 9.99999971E-10 : f32
      %19 = vector.broadcast %cst_19 : f32 to vector<2x1xf32>
      %20 = arith.maximumf %18, %19 : vector<2x1xf32>
      %c0_20 = arith.constant 0 : index
      %c0_21 = arith.constant 0 : index
      %21 = vector.load %arg5[%c0_20, %c0_21] : memref<2x32xf32, #tpu.memory_space<vmem>>, vector<2x32xf32>
      %22 = vector.broadcast %20 : vector<2x1xf32> to vector<2x32xf32>
      %23 = arith.divf %21, %22 : vector<2x32xf32>
      %c0_22 = arith.constant 0 : index
      %c0_23 = arith.constant 0 : index
      %24 = vector.load %arg4[%c0_22, %c0_23] : memref<2x32xf32, #tpu.memory_space<vmem>>, vector<2x32xf32>
      tpu.vector_store %arg4[%c0_22, %c0_23], %23 {strides = array<i32>} : memref<2x32xf32, #tpu.memory_space<vmem>>, vector<2x32xf32>,
    } else {
    }
    return
  }
  func.func @transform_0(%arg0: i32, %arg1: i32) -> (i32, i32, i32) {
    %c0_i32 = arith.constant 0 : i32
    %c0_i32_0 = arith.constant 0 : i32
    return %arg0, %arg1, %c0_i32 : i32, i32, i32
  }
  func.func @transform_1(%arg0: i32, %arg1: i32) -> (i32, i32, i32) {
    %c0_i32 = arith.constant 0 : i32
    %c0_i32_0 = arith.constant 0 : i32
    return %arg0, %arg1, %c0_i32 : i32, i32, i32
  }
  func.func @transform_2(%arg0: i32, %arg1: i32) -> (i32, i32) {
    %c0_i32 = arith.constant 0 : i32
    %c0_i32_0 = arith.constant 0 : i32
    return %arg0, %c0_i32 : i32, i32
  }
}

</mosaic_0001>

<bundles_post_ra>
// kernel: tpu_custom_call.1
= control target key start
LH: loop header
LB: loop body
LE: loop exit
PB: predicated region body
PF: predicated region fallthrough
CT: control target
= control target key end

     0   :  { %vm61_vm0 = vcmask 7168   ;;  %v159_v2 = vmov 0   ;;  %vm18_vm1 = vcmask 1024   ;;  %s199_s0 = inlined_call_operand.vmem [shape: f32[2,8,32], index: 0, kind: input, shape index: {}]   ;;  %s200_s1 = inlined_call_operand.vmem [shape: f32[2,8,1], index: 1, kind: input, shape index: {}]   ;;  %s201_s2 = inlined_call_operand.hbm [shape: f32[2,32], index: 2, kind: output, shape index: {}]  }
   0x1   :  { %v22_v0 = vld [vmem:[%s200_s1] sm:$0xff]  ;;  %v23_v1 = vld [vmem:[%s200_s1 + $0x8] sm:$0xff]  ;;  %129 = vset.pattern.permute.xlu0 %v159_v2  ;;  %130 = vset.pattern.permute.xlu1 %v159_v2 }
   0x2   :  { %v62_v3 = vsel %vm61_vm0, %v22_v0, 0.0  ;;  %v69_v4 = vsel %vm61_vm0, %v23_v1, 0.0 }
   0x3   :  { %7 = vsyncpa [#allocation5], 0  ;;  %27 = vperm.xlu0 %129, %v22_v0   ;;  %v63_v5 = vrot.slane %v62_v3, 4  ;;  %v70_v6 = vrot.slane %v69_v4, 4  ;;  %v160_v7 = vmov 0.0   ;;  %vm54_vm2 = vcmask 1041409  }
   0x4   :  { %19 = vst.msk [vmem:[#allocation3] sm:$0x3] %vm18_vm1, %v160_v7  ;;  %vm16_vm3 = vcmask 254976   ;;  %v20_v23 = vld [vmem:[%s199_s0] sm:$0xff]  ;;  %vm37_vm4 = vcmask 261120   ;;  %v21_v29 = vld [vmem:[%s199_s0 + $0x8] sm:$0xff] }
   0x5   :  { %v64_v8 = vadd.f32 %v63_v5, %v62_v3  ;;  %v71_v9 = vadd.f32 %v70_v6, %v69_v4  ;;  %17 = vst.msk [vmem:[#allocation2] sm:$0x3] %vm16_vm3, %v160_v7  ;;  %s161_s0 = smov [#allocation4]   ;;  %s117_s19 = sshll.u32 %s201_s2, 4  ;;  %s118_s19 = int_to_ptr.hbm [resolvable:$true] %s117_s19 }
   0x6   :  { %s115_s16 = sshll.u32 %s161_s0, 4  ;;  %s116_s16 = int_to_ptr.vmem [resolvable:$true] %s115_s16 }
   0x7   :  { %v65_v10 = vrot.slane %v64_v8, 2  ;;  %v72_v11 = vrot.slane %v71_v9, 2 }
   0x9   :  { %v66_v12 = vadd.f32 %v65_v10, %v64_v8  ;;  %v73_v13 = vadd.f32 %v72_v11, %v71_v9 }
   0xb   :  { %v67_v14 = vrot.slane %v66_v12, 1  ;;  %v74_v15 = vrot.slane %v73_v13, 1  ;;  %32 = vperm.xlu0 %129, %v23_v1   ;;  %v60_v18 = vld [vmem:[#allocation3] sm:$0x3] }
   0xc   :  { %v24_v43 = vld [vmem:[#allocation2] sm:$0x3] }
   0xd   :  { %v68_v16 = vadd.f32 %v67_v14, %v66_v12  ;;  %v75_v17 = vadd.f32 %v74_v15, %v73_v13 }
   0xf   :  { %v78_v19 = vsel %vm54_vm2, %v75_v17, %v68_v16 }
  0x10   :  { %v80_v20 = vadd.f32 %v78_v19, %v60_v18 }
  0x12   :  { %82 = vst.msk [vmem:[#allocation3] sm:$0x3] %vm18_vm1, %v80_v20 }
  0x19   :  { %v86_v21 = vld [vmem:[#allocation3] sm:$0x3] }
  0x1a   :  { %v87_v22 = vmax.f32 %v86_v21, 1e-09 }
  0x1c   :  { %91 = vperm.xlu1 %130, %v87_v22  }
  0x75   :  { %v28_v24 = vpop.permute.xlu0 %27 }
  0x76   :  { %v35_v25 = vmul.f32 %v28_v24, %v20_v23 }
  0x78   :  { %v38_v26 = vsel %vm37_vm4, %v35_v25, 0.0 }
  0x79   :  { %v39_v27 = vrot.slane %v38_v26, 4 }
  0x7b   :  { %v40_v28 = vadd.f32 %v39_v27, %v38_v26 }
  0x7d   :  { %v33_v30 = vpop.permute.xlu0 %32  ;;  %v41_v32 = vrot.slane %v40_v28, 2 }
  0x7e   :  { %v36_v31 = vmul.f32 %v33_v30, %v21_v29 }
  0x7f   :  { %v42_v35 = vadd.f32 %v41_v32, %v40_v28 }
  0x80   :  { %v45_v33 = vsel %vm37_vm4, %v36_v31, 0.0 }
  0x81   :  { %v46_v34 = vrot.slane %v45_v33, 4  ;;  %v43_v38 = vrot.slane %v42_v35, 1 }
  0x83   :  { %v47_v36 = vadd.f32 %v46_v34, %v45_v33  ;;  %v44_v41 = vadd.f32 %v43_v38, %v42_v35 }
  0x85   :  { %v48_v37 = vrot.slane %v47_v36, 2 }
  0x87   :  { %v49_v39 = vadd.f32 %v48_v37, %v47_v36 }
  0x89   :  { %v50_v40 = vrot.slane %v49_v39, 1 }
  0x8b   :  { %v51_v42 = vadd.f32 %v50_v40, %v49_v39 }
  0x8d   :  { %v55_v44 = vsel %vm54_vm2, %v51_v42, %v44_v41 }
  0x8e   :  { %v92_v45 = vpop.permute.xlu1 %91  ;;  %v57_v46 = vadd.f32 %v55_v44, %v24_v43 }
  0x8f   :  { %131 = vrcp.f32 %v92_v45  ;;  %v105_v50 = vand.u32 2147483648, %v92_v45  ;;  %v103_v52 = vand.u32 2147483647, %v92_v45  ;;  %vm99_vm6 = vweird.f32 %v92_v45 }
  0x90   :  { %59 = vst.msk [vmem:[#allocation2] sm:$0x3] %vm16_vm3, %v57_v46 }
  0x91   :  { %v106_v54 = vor.u32 1.1754944e-38, %v105_v50  ;;  %vm104_vm8 = vcmp.eq.f32.partialorder %v103_v52, 8.507059e+37 }
  0x95   :  { %v132_v47 = vpop.eup %131 }
  0x96   :  { %v95_v48 = vmul.f32 %v132_v47, %v92_v45  ;;  %vm100_vm5 = vweird.f32 %v132_v47 }
  0x97   :  { %vm101_vm7 = vmor %vm99_vm6, %vm100_vm5  ;;  %v88_v56 = vld [vmem:[#allocation2] sm:$0x3] }
  0x98   :  { %v96_v49 = vsub.f32 1.0, %v95_v48 }
  0x9a   :  { %v97_v51 = vmul.f32 %v132_v47, %v96_v49 }
  0x9c   :  { %v98_v53 = vadd.f32 %v132_v47, %v97_v51 }
  0x9e   :  { %v102_v55 = vsel %vm101_vm7, %v132_v47, %v98_v53 }
  0x9f   :  { %v107_v57 = vsel %vm104_vm8, %v106_v54, %v102_v55 }
  0xa0   :  { %v108_v58 = vmul.f32 %v107_v57, %v88_v56 }
  0xa2   :  { %109 = vst.msk [vmem:[#allocation4] sm:$0x3] %vm16_vm3, %v108_v58 }
  0xa3   :  { %120 = dma.vmem_to_hbm [thread:$0]  %s116_s16, 32, %s118_s19, [#allocation5]  }
  0xa4   :  { %157 = dma.done.wait [#allocation5], 32  }
  0xa5   :  { %158 = vsyncadd [#allocation5], 4294967264 }
  0xa6   :  { %125 = vsyncpa [#allocation5], 1 }

</bundles_post_ra>
